<compile_context>
chip_gen: v6e
topology: v6e:2x2x1
jax: 0.10.0
libtpu: 0.0.40
codegen_flags: <defaults>
</compile_context>

<pallas_src>
import jax
import jax.numpy as jnp
import numpy as np
from jax.experimental import pallas as pl
from jax.experimental.pallas import tpu as pltpu

NUM_STATES = 51          # x[:, 1:52] -> 51 one-hot columns (fixed by the slicing)
NUM_INDUSTRIES = 20
EMB_DIM = 8
H1 = 64
H2 = 32
OUT = 1
B = 8                    # demo batch


def _round_up(n, m):
    return ((n + m - 1) // m) * m


# --------------------------------------------------------------------------
# Kernels
# --------------------------------------------------------------------------
def _mlp(sel, w1_ref, b1_ref, w2_ref, b2_ref, w3r_ref, b3_ref):
    """sel: (TB, F) selection matrix (or the raw one-hot x on the fast path)."""
    # TODO(synk): training-mode dropout not implemented (inference no-op).
    h1 = jnp.maximum(
        jnp.dot(sel, w1_ref[...], preferred_element_type=jnp.float32)
        + b1_ref[...], 0.0)
    h2 = jnp.maximum(
        jnp.dot(h1, w2_ref[...], preferred_element_type=jnp.float32)
        + b2_ref[...], 0.0)
    # Final H2 -> 1 contraction on VPU/XLU (an MXU pass with N=1 streams all
    # rows for 1 useful lane).  The 100x scale is folded into w3r/b3 on host.
    return jnp.sum(h2 * w3r_ref[...], axis=1, keepdims=True) + b3_ref[...]


def survival_kernel_onehot(x_ref, w1_ref, b1_ref, w2_ref, b2_ref,
                           w3r_ref, b3_ref, o_ref):
    # Fast path: col 0 already holds unemployment and the one-hot blocks are
    # already the selection matrix for the fused W1 -> feed x straight in.
    o_ref[...] = _mlp(x_ref[...], w1_ref, b1_ref, w2_ref, b2_ref,
                      w3r_ref, b3_ref)


def _build_sel(x):
    """Exact torch.argmax semantics for arbitrary (non-one-hot) inputs.

    Uses full-width iota range masks (keeps data in its original lanes; no
    lane-offset slices at columns 1 / 52).
    """
    F = x.shape[1]
    iota = jax.lax.broadcasted_iota(jnp.int32, x.shape, 1)     # (TB, F)
    in_state = (iota >= 1) & (iota < 1 + NUM_STATES)
    in_ind = iota >= 1 + NUM_STATES
    neg_inf = jnp.float32(-jnp.inf)

    def first_argmax_col(mask):
        v = jnp.where(mask, x, neg_inf)
        mx = jnp.max(v, axis=1, keepdims=True)
        cand = jnp.where((v == mx) & mask, iota, F)
        return jnp.min(cand, axis=1, keepdims=True)            # (TB, 1) abs col

    s_col = first_argmax_col(in_state)   # in [1, 52)
    i_col = first_argmax_col(in_ind)     # in [52, F)

    sel = ((iota == s_col) | (iota == i_col)).astype(jnp.float32)
    # Column 0 carries the unemployment value itself.
    return jnp.where(iota == 0, x, sel)


def survival_kernel_argmax(x_ref, w1_ref, b1_ref, w2_ref, b2_ref,
                           w3r_ref, b3_ref, o_ref):
    sel = _build_sel(x_ref[...])
    o_ref[...] = _mlp(sel, w1_ref, b1_ref, w2_ref, b2_ref, w3r_ref, b3_ref)


# --------------------------------------------------------------------------
# Host-side wrappers
# --------------------------------------------------------------------------
def prepare_fast_params(params):
    """One-time (per model) weight prep: fold tables into W1, fold 100x scale."""
    st, it, w1, b1, w2, b2, w3, b3 = params
    w1_fused = jnp.concatenate(
        [w1[0:1, :], st @ w1[1:1 + EMB_DIM, :], it @ w1[1 + EMB_DIM:, :]],
        axis=0)                                   # (1 + 51 + NI, H1)
    w3_row = 100.0 * w3.reshape(1, H2)            # (1, H2), scale folded
    b3_s = 100.0 * b3.reshape(1, OUT)             # (1, 1),  scale folded
    return (w1_fused, b1, w2, b2, w3_row, b3_s)


def survival_forward(x, fast_params, *, block_b=2048, gridless_max=512,
                     assume_one_hot=True):
    """Forward pass.

    block_b:       max batch tile for the grid path (multiple of 8).
    gridless_max:  batches <= this run as a single gridless VMEM-resident call.
    assume_one_hot: skip the argmax preamble (only valid for one-hot inputs).
    """
    w1f, b1, w2, b2, w3r, b3 = fast_params
    weights = (w1f, b1, w2, b2, w3r, b3)
    kernel = survival_kernel_onehot if assume_one_hot else survival_kernel_argmax
    Bx, F = x.shape

    def gridless(xs):
        n = xs.shape[0]
        n_p = _round_up(max(n, 1), 8)
        if n_p != n:
            xs = jnp.pad(xs, ((0, n_p - n), (0, 0)))
        vmem = pl.BlockSpec(memory_space=pltpu.MemorySpace.VMEM)
        out = pl.pallas_call(
            kernel,
            out_shape=jax.ShapeDtypeStruct((n_p, OUT), jnp.float32),
            in_specs=[vmem] * 7,
            out_specs=vmem,
        )(xs, *weights)
        return out[:n]

    if Bx <= gridless_max:
        return gridless(x)

    # ---- batch-tiled grid path -------------------------------------------
    # Tile: multiple of 8, capped at block_b, and small enough that the grid
    # has >= 2 steps (v7x has 2 TensorCores sharded over "parallel" axes).
    block_b = max(8, (block_b // 8) * 8)
    TB = max(8, min(block_b, (Bx // 2) // 8 * 8))
    num_main = Bx // TB
    Bm = num_main * TB

    # v5e's default scoped VMEM is 16 MiB; only raise it for very large tiles.
    bytes_per_row = 4 * (3 * F + 2 * OUT + H1 + 2 * H2)   # x (2 bufs) + temps
    est = TB * bytes_per_row + (2 << 20)
    vmem_limit = None
    if est > (16 << 20):
        vmem_limit = min(est + (8 << 20), 96 << 20)

    def const2(shape):
        return pl.BlockSpec(shape, lambda i: (0, 0))

    # The grid touches only the full tiles of x (rows [0, Bm)); no jnp.pad /
    # HBM copy of x.  Weights use constant block indices -> DMA'd once.
    out_main = pl.pallas_call(
        kernel,
        out_shape=jax.ShapeDtypeStruct((Bm, OUT), jnp.float32),
        grid=(num_main,),
        in_specs=[
            pl.BlockSpec((TB, F), lambda i: (i, 0)),
            const2(w1f.shape), const2(b1.shape),
            const2(w2.shape), const2(b2.shape),
            const2(w3r.shape), const2(b3.shape),
        ],
        out_specs=pl.BlockSpec((TB, OUT), lambda i: (i, 0)),
        compiler_params=pltpu.CompilerParams(
            dimension_semantics=("parallel",),
            vmem_limit_bytes=vmem_limit),
    )(x, *weights)

    rem = Bx - Bm
    if rem == 0:
        return out_main
    # Ragged tail (< TB rows): tiny slice + gridless call instead of padding x.
    out_tail = gridless(x[Bm:])
    return jnp.concatenate([out_main, out_tail], axis=0)


# --------------------------------------------------------------------------
# Parameter init / reference / demo inputs
# --------------------------------------------------------------------------
def init_params(key):
    """Deterministic parameter init (uniform, PyTorch-Linear-like bounds)."""
    ks = jax.random.split(key, 8)

    def lin(kw, kb, fan_in, fan_out):
        bound = 1.0 / np.sqrt(fan_in)
        w = jax.random.uniform(kw, (fan_in, fan_out), jnp.float32, -bound, bound)
        b = jax.random.uniform(kb, (1, fan_out), jnp.float32, -bound, bound)
        return w, b

    combined_in = 1 + EMB_DIM + EMB_DIM  # 17
    st_table = jax.random.normal(ks[0], (NUM_STATES, EMB_DIM), jnp.float32)
    it_table = jax.random.normal(ks[1], (NUM_INDUSTRIES, EMB_DIM), jnp.float32)
    w1, b1 = lin(ks[2], ks[3], combined_in, H1)
    w2, b2 = lin(ks[4], ks[5], H1, H2)
    w3, b3 = lin(ks[6], ks[7], H2, OUT)
    return (st_table, it_table, w1, b1, w2, b2, w3, b3)


def reference_forward(x, params):
    """Pure-JAX reference mirroring the PyTorch forward (unfused)."""
    st, it, w1, b1, w2, b2, w3, b3 = params
    unemployment = x[:, 0:1]
    state_idx = jnp.argmax(x[:, 1:1 + NUM_STATES], axis=1)
    industry_idx = jnp.argmax(x[:, 1 + NUM_STATES:], axis=1)
    combined = jnp.concatenate([unemployment, st[state_idx], it[industry_idx]],
                               axis=1)
    h1 = jnp.maximum(combined @ w1 + b1, 0.0)
    h2 = jnp.maximum(h1 @ w2 + b2, 0.0)
    return 100.0 * (h2 @ w3 + b3)


def _make_inputs(key, batch):
    k_unemp, k_state, k_ind = jax.random.split(key, 3)
    unemp = jax.random.uniform(k_unemp, (batch, 1), jnp.float32, 0.0, 10.0)
    state_idx = jax.random.randint(k_state, (batch,), 0, NUM_STATES)
    industry_idx = jax.random.randint(k_ind, (batch,), 0, NUM_INDUSTRIES)
    state_oh = jax.nn.one_hot(state_idx, NUM_STATES, dtype=jnp.float32)
    industry_oh = jax.nn.one_hot(industry_idx, NUM_INDUSTRIES, dtype=jnp.float32)
    return jnp.concatenate([unemp, state_oh, industry_oh], axis=1)  # (batch, 72)


if __name__ == "__main__":
    key = jax.random.PRNGKey(0)
    k_params, k_small, k_big = jax.random.split(key, 3)
    params = init_params(k_params)
    fast_params = prepare_fast_params(params)   # per-model, reused every call

    # 1) Small batch, gridless path, fast (one-hot) kernel.
    x = _make_inputs(k_small, B)                                  # (8, 72)
    out = jax.block_until_ready(survival_forward(x, fast_params))
    ref = reference_forward(x, params)
    np.testing.assert_allclose(np.asarray(out), np.asarray(ref),
                               rtol=1e-5, atol=1e-3)

    # 2) Same batch through the exact-argmax kernel (non-one-hot-safe path).
    out_am = jax.block_until_ready(
        survival_forward(x, fast_params, assume_one_hot=False))
    np.testing.assert_allclose(np.asarray(out_am), np.asarray(ref),
                               rtol=1e-5, atol=1e-3)

    # 3) Larger batch forced through the batch-tiled grid path with a ragged
    #    tail (40 rows -> 2 grid tiles of 16 + gridless tail of 8).
    x_big = _make_inputs(k_big, 40)                               # (40, 72)
    ref_big = reference_forward(x_big, params)
    out_big = jax.block_until_ready(
        survival_forward(x_big, fast_params, block_b=16, gridless_max=8))
    np.testing.assert_allclose(np.asarray(out_big), np.asarray(ref_big),
                               rtol=1e-5, atol=1e-3)

    # 4) Grid path with the exact-argmax kernel as well.
    out_big_am = jax.block_until_ready(
        survival_forward(x_big, fast_params, block_b=16, gridless_max=8,
                         assume_one_hot=False))
    np.testing.assert_allclose(np.asarray(out_big_am), np.asarray(ref_big),
                               rtol=1e-5, atol=1e-3)

    print("KERNEL_OK")
</pallas_src>

<mosaic_0001>
module attributes {stable_mosaic.version = 11 : i64} {
  func.func @survival_kernel_onehot(%arg0: memref<8x72xf32, #tpu.memory_space<vmem>>, %arg1: memref<72x64xf32, #tpu.memory_space<vmem>>, %arg2: memref<1x64xf32, #tpu.memory_space<vmem>>, %arg3: memref<64x32xf32, #tpu.memory_space<vmem>>, %arg4: memref<1x32xf32, #tpu.memory_space<vmem>>, %arg5: memref<1x32xf32, #tpu.memory_space<vmem>>, %arg6: memref<1x1xf32, #tpu.memory_space<vmem>>, %arg7: memref<8x1xf32, #tpu.memory_space<vmem>>) attributes {dimension_semantics = [], scalar_prefetch = 0 : i64, scratch_operands = 0 : i64, tpu.core_type = #tpu.core_type<tc>} {
    %c0 = arith.constant 0 : index
    %c0_0 = arith.constant 0 : index
    %0 = vector.load %arg0[%c0, %c0_0] : memref<8x72xf32, #tpu.memory_space<vmem>>, vector<8x72xf32>
    %c0_1 = arith.constant 0 : index
    %c0_2 = arith.constant 0 : index
    %1 = vector.load %arg1[%c0_1, %c0_2] : memref<72x64xf32, #tpu.memory_space<vmem>>, vector<72x64xf32>
    %cst = arith.constant dense<0.000000e+00> : vector<8x64xf32>
    %2 = tpu.matmul %0, %1, %cst {dimension_numbers = #tpu.dot_dimension_numbers<[1], [0], [0], [1], [0, 0, 1, 1], [], []>} : vector<8x72xf32>, vector<72x64xf32>, vector<8x64xf32> -> vector<8x64xf32>
    %c0_3 = arith.constant 0 : index
    %c0_4 = arith.constant 0 : index
    %3 = vector.load %arg2[%c0_3, %c0_4] : memref<1x64xf32, #tpu.memory_space<vmem>>, vector<1x64xf32>
    %4 = vector.broadcast %3 : vector<1x64xf32> to vector<8x64xf32>
    %5 = arith.addf %2, %4 : vector<8x64xf32>
    %cst_5 = arith.constant 0.000000e+00 : f32
    %6 = vector.broadcast %cst_5 : f32 to vector<8x64xf32>
    %7 = arith.maximumf %5, %6 : vector<8x64xf32>
    %c0_6 = arith.constant 0 : index
    %c0_7 = arith.constant 0 : index
    %8 = vector.load %arg3[%c0_6, %c0_7] : memref<64x32xf32, #tpu.memory_space<vmem>>, vector<64x32xf32>
    %cst_8 = arith.constant dense<0.000000e+00> : vector<8x32xf32>
    %9 = tpu.matmul %7, %8, %cst_8 {dimension_numbers = #tpu.dot_dimension_numbers<[1], [0], [0], [1], [0, 0, 1, 1], [], []>} : vector<8x64xf32>, vector<64x32xf32>, vector<8x32xf32> -> vector<8x32xf32>
    %c0_9 = arith.constant 0 : index
    %c0_10 = arith.constant 0 : index
    %10 = vector.load %arg4[%c0_9, %c0_10] : memref<1x32xf32, #tpu.memory_space<vmem>>, vector<1x32xf32>
    %11 = vector.broadcast %10 : vector<1x32xf32> to vector<8x32xf32>
    %12 = arith.addf %9, %11 : vector<8x32xf32>
    %cst_11 = arith.constant 0.000000e+00 : f32
    %13 = vector.broadcast %cst_11 : f32 to vector<8x32xf32>
    %14 = arith.maximumf %12, %13 : vector<8x32xf32>
    %c0_12 = arith.constant 0 : index
    %c0_13 = arith.constant 0 : index
    %15 = vector.load %arg5[%c0_12, %c0_13] : memref<1x32xf32, #tpu.memory_space<vmem>>, vector<1x32xf32>
    %16 = vector.broadcast %15 : vector<1x32xf32> to vector<8x32xf32>
    %17 = arith.mulf %14, %16 : vector<8x32xf32>
    %cst_14 = arith.constant dense<0.000000e+00> : vector<8xf32>
    %18 = vector.multi_reduction <add>, %17, %cst_14 [1] : vector<8x32xf32> to vector<8xf32>
    %19 = vector.shape_cast %18 : vector<8xf32> to vector<8x1xf32>
    %c0_15 = arith.constant 0 : index
    %c0_16 = arith.constant 0 : index
    %20 = vector.load %arg6[%c0_15, %c0_16] : memref<1x1xf32, #tpu.memory_space<vmem>>, vector<1x1xf32>
    %21 = vector.broadcast %20 : vector<1x1xf32> to vector<8x1xf32>
    %22 = arith.addf %19, %21 : vector<8x1xf32>
    %c0_17 = arith.constant 0 : index
    %c0_18 = arith.constant 0 : index
    %23 = vector.load %arg7[%c0_17, %c0_18] : memref<8x1xf32, #tpu.memory_space<vmem>>, vector<8x1xf32>
    tpu.vector_store %arg7[%c0_17, %c0_18], %22 {strides = array<i32>} : memref<8x1xf32, #tpu.memory_space<vmem>>, vector<8x1xf32>,
    return
  }
}

</mosaic_0001>

<bundles_post_ra>
// kernel: tpu_custom_call.1
= control target key start
LH: loop header
LB: loop body
LE: loop exit
PB: predicated region body
PF: predicated region fallthrough
CT: control target
= control target key end

     0   :  { %v303_v0 = vmov 0.0   ;;  %vm304_vm0 = vmmov 0   ;;  %vm45_vm1 = vcmask 588800   ;;  %vm135_vm2 = vcmask 523264   ;;  %s414_s1 = inlined_call_operand.vmem [shape: f32[72,64], index: 1, kind: input, shape index: {}]   ;;  %s415_s3 = inlined_call_operand.vmem [shape: f32[64,32], index: 3, kind: input, shape index: {}]   ;;  %s416_s0 = inlined_call_operand.vmem [shape: f32[8,72], index: 0, kind: input, shape index: {}]   ;;  %s417_s2 = inlined_call_operand.vmem [shape: f32[1,64], index: 2, kind: input, shape index: {}]   ;;  %s418_s6 = inlined_call_operand.<no memory space> [shape: f32[1,1], index: 6, kind: input, shape index: {}]   ;;  %s419_s4 = inlined_call_operand.vmem [shape: f32[1,32], index: 4, kind: input, shape index: {}]   ;;  %s420_s5 = inlined_call_operand.vmem [shape: f32[1,32], index: 5, kind: input, shape index: {}]   ;;  %s421_s7 = inlined_call_operand.vmem [shape: f32[8,1], index: 7, kind: output, shape index: {}]  }
   0x1   :  { %261 = vmatprep.subr.mxu0 %v303_v0  ;;  %v37_v1 = vld [vmem:[%s414_s1 + $0x40] sm:$0xff]  ;;  %v36_v2 = vld [vmem:[%s414_s1 + $0x38] sm:$0xff]  ;;  %279 = vmatprep.mubr.msk.f32.mxu0 %vm304_vm0, %v303_v0  ;;  %v35_v3 = vld [vmem:[%s414_s1 + $0x30] sm:$0xff]  ;;  %v12_v24 = vstv %s418_s6  ;;  %vm218_vm3 = vcmask 261120   ;;  %vm230_vm4 = vcmask 7168  }
   0x2   :  { %262 = vmatpush3.msra.mxu0 %v37_v1  ;;  %282 = vmatprep.subr.mxu1 %v303_v0  ;;  %v127_v4 = vld [vmem:[%s415_s3 + $0x38] sm:$0xff]  ;;  %v126_v5 = vld [vmem:[%s415_s3 + $0x30] sm:$0xff]  ;;  %v34_v6 = vld [vmem:[%s414_s1 + $0x28] sm:$0xff]  ;;  %13 = vst [vmem:[#allocation2] sm:$0x1] %v12_v24 }
   0x3   :  { %263 = vmatprep.subr.mxu0 %v303_v0  ;;  %298 = vmatprep.mubr.msk.f32.mxu1 %vm304_vm0, %v303_v0  ;;  %v125_v7 = vld [vmem:[%s415_s3 + $0x28] sm:$0xff]  ;;  %v33_v8 = vld [vmem:[%s414_s1 + $0x20] sm:$0xff]  ;;  %v32_v10 = vld [vmem:[%s414_s1 + $0x18] sm:$0xff] }
   0x4   :  { %264 = vmatpush3.msra.mxu0 %v36_v2  ;;  %283 = vmatpush3.msra.mxu1 %v127_v4  ;;  %v124_v9 = vld [vmem:[%s415_s3 + $0x20] sm:$0xff]  ;;  %v123_v11 = vld [vmem:[%s415_s3 + $0x18] sm:$0xff]  ;;  %v31_v12 = vld [vmem:[%s414_s1 + $0x10] sm:$0xff] }
   0x5   :  { %265 = vmatprep.subr.mxu0 %v303_v0  ;;  %284 = vmatprep.subr.mxu1 %v303_v0  ;;  %v30_v13 = vld [vmem:[%s414_s1 + $0x8] sm:$0xff]  ;;  %v29_v14 = vld [vmem:[%s414_s1] sm:$0xff]  ;;  %v122_v16 = vld [vmem:[%s415_s3 + $0x10] sm:$0xff] }
   0x6   :  { %266 = vmatpush3.msra.mxu0 %v35_v3  ;;  %285 = vmatpush3.msra.mxu1 %v126_v5  ;;  %v28_v15 = vld [vmem:[%s416_s0] sm:$0xff]  ;;  %v121_v17 = vld [vmem:[%s415_s3 + $0x8] sm:$0xff] }
   0x7   :  { %267 = vmatprep.subr.mxu0 %v303_v0  ;;  %286 = vmatprep.subr.mxu1 %v303_v0  ;;  %v120_v18 = vld [vmem:[%s415_s3] sm:$0xff] }
   0x8   :  { %268 = vmatpush3.msra.mxu0 %v34_v6  ;;  %287 = vmatpush3.msra.mxu1 %v125_v7  ;;  %v236_v19 = vld [vmem:[%s417_s2] ss:$0 sm:$0xff] }
   0x9   :  { %269 = vmatprep.subr.mxu0 %v303_v0  ;;  %288 = vmatprep.subr.mxu1 %v303_v0  ;;  %v238_v25 = vld [vmem:[%s419_s4] ss:$0 sm:$0xff] }
   0xa   :  { %270 = vmatpush3.msra.mxu0 %v33_v8  ;;  %289 = vmatpush3.msra.mxu1 %v124_v9  ;;  %v240_v29 = vld [vmem:[%s420_s5] ss:$0 sm:$0xff] }
   0xb   :  { %271 = vmatprep.subr.mxu0 %v303_v0  ;;  %290 = vmatprep.subr.mxu1 %v303_v0  ;;  %v241_v33 = vld [vmem:[#allocation2] ss:$0 sm:$0xff] }
   0xc   :  { %272 = vmatpush3.msra.mxu0 %v32_v10  ;;  %291 = vmatpush3.msra.mxu1 %v123_v11 }
   0xd   :  { %273 = vmatprep.subr.mxu0 %v303_v0  ;;  %292 = vmatprep.subr.mxu1 %v303_v0 }
   0xe   :  { %274 = vmatpush3.msra.mxu0 %v31_v12  ;;  %293 = vmatpush3.msra.mxu1 %v122_v16 }
   0xf   :  { %275 = vmatprep.subr.mxu0 %v303_v0  ;;  %294 = vmatprep.subr.mxu1 %v303_v0 }
  0x10   :  { %276 = vmatpush3.msra.mxu0 %v30_v13  ;;  %295 = vmatpush3.msra.mxu1 %v121_v17 }
  0x11   :  { %277 = vmatprep.subr.mxu0 %v303_v0  ;;  %296 = vmatprep.subr.mxu1 %v303_v0 }
  0x12   :  { %278 = vmatpush3.msra.mxu0 %v29_v14  ;;  %297 = vmatpush3.msra.mxu1 %v120_v18 }
  0x13   :  { %280 = vmatmul.mubr.msk.f32.vlgmr.msra.gmra.mxu0 %vm45_vm1, %v28_v15 }
  0xd3   :  { %v115_v20 = vpop.f32.mrf.mxu0 }
  0xd4   :  { %v116_v21 = vadd.f32 %v236_v19, %v115_v20 }
  0xd5   :  { %v281_v22 = vpop.f32.mrf.mxu0 }
  0xd6   :  { %v119_v23 = vmax.f32 %v116_v21, 0.0 }
  0xd8   :  { %299 = vmatmul.mubr.msk.f32.vlgmr.msra.gmra.mxu1 %vm135_vm2, %v119_v23 }
 0x198   :  { %v205_v26 = vpop.f32.mrf.mxu1 }
 0x199   :  { %v206_v27 = vadd.f32 %v238_v25, %v205_v26 }
 0x19a   :  { %v300_v28 = vpop.f32.mrf.mxu1 }
 0x19b   :  { %v209_v30 = vmax.f32 %v206_v27, 0.0 }
 0x19d   :  { %v217_v31 = vmul.f32 %v240_v29, %v209_v30 }
 0x19f   :  { %v219_v32 = vsel %vm218_vm3, %v217_v31, 0.0 }
 0x1a0   :  { %220 = vadd.xlane.f32.xlu0 %v219_v32 }
 0x229   :  { %v221_v34 = vpop.xlane.xlu0 %220 }
 0x22a   :  { %v229_v35 = vadd.f32 %v241_v33, %v221_v34 }
 0x22c   :  { %231 = vst.msk [vmem:[%s421_s7] sm:$0xff] %vm230_vm4, %v229_v35 }

</bundles_post_ra>
